<compile_context>
chip_gen: v6e
topology: v6e:2x2x1
jax: 0.10.0
libtpu: 0.0.40
codegen_flags: <defaults>
</compile_context>

<pallas_src>
import functools
import math

import jax
import jax.numpy as jnp
from jax.experimental import pallas as pl
from jax.experimental.pallas import tpu as pltpu


def _ia2_kernel(img_ref, pt_ref, w2_ref, b2_ref, out_ref, *, inv_sqrt_d):
    img = img_ref[0].astype(jnp.float32)     # (ic, N)  channels on sublanes, tokens on lanes
    pt = pt_ref[0].astype(jnp.float32)       # (pc, N)
    w2 = w2_ref[...].astype(jnp.float32)     # (pc, ic)  torch Linear weight (out, in)
    b2 = b2_ref[...].astype(jnp.float32)     # (pc, 1)

    # fc2 in NCL orientation: ri_col[c, i] = (W2 @ img)[c, i] + b2[c]
    ri_col = jnp.dot(w2, img, preferred_element_type=jnp.float32) + b2   # (pc, N)

    # scores[i, j] = sum_c ri_col[c, i] * pt[c, j] / sqrt(pc)   (== ri @ point^T in row layout)
    scores = jax.lax.dot_general(
        ri_col, pt, (((0,), (0,)), ((), ())),
        preferred_element_type=jnp.float32) * inv_sqrt_d                 # (N, N)

    # torch F.softmax(scores, dim=1): normalize over the first N axis (query/ri axis)
    m = jnp.max(scores, axis=0, keepdims=True)                           # (1, N)
    e = jnp.exp(scores - m)
    attn = e / jnp.sum(e, axis=0, keepdims=True)                         # (N, N)

    # out[i, c] = sum_j attn[i, j] * ri_col[c, j]   (== attn @ ri in row layout)
    out = jax.lax.dot_general(
        attn, ri_col, (((1,), (1,)), ((), ())),
        preferred_element_type=jnp.float32)                              # (N, pc)
    out_ref[0] = out.astype(out_ref.dtype)


def init_params(key, ic, pc):
    """Deterministic synthetic fc2 parameters (torch Linear: weight (out, in))."""
    k_w, k_b = jax.random.split(key, 2)
    scale = 0.1
    return {
        "fc2_w": scale * jax.random.normal(k_w, (pc, ic), jnp.float32),
        "fc2_b": scale * jax.random.normal(k_b, (pc,), jnp.float32),
    }


@jax.jit
def ia_layer2_forward(img_feas, point_feas, params):
    B, ic, N = img_feas.shape
    _, pc, Np = point_feas.shape
    assert Np == N, "img and point streams must share the token count (bmm requires it)"

    w2 = params["fc2_w"]                   # (pc, ic)
    b2 = params["fc2_b"].reshape(pc, 1)    # column bias for the NCL-orientation matmul

    kernel = functools.partial(_ia2_kernel, inv_sqrt_d=1.0 / math.sqrt(pc))

    return pl.pallas_call(
        kernel,
        out_shape=jax.ShapeDtypeStruct((B, N, pc), img_feas.dtype),
        grid=(B,),
        in_specs=[
            pl.BlockSpec((1, ic, N), lambda b: (b, 0, 0)),   # img_feas, native NCL (no pre-transpose)
            pl.BlockSpec((1, pc, N), lambda b: (b, 0, 0)),   # point_feas, native NCL
            pl.BlockSpec((pc, ic), lambda b: (0, 0)),        # fc2 weight, VMEM-resident
            pl.BlockSpec((pc, 1), lambda b: (0, 0)),         # fc2 bias
        ],
        out_specs=pl.BlockSpec((1, N, pc), lambda b: (b, 0, 0)),
        compiler_params=pltpu.CompilerParams(
            dimension_semantics=("parallel",)),              # batch steps split across TCs (v7x)
    )(img_feas, point_feas, w2, b2)


def _reference(img_feas, point_feas, params):
    """Pure-JAX mirror of the torch forward (dropout in eval mode)."""
    B, ic, N = img_feas.shape
    _, pc, _ = point_feas.shape
    img_f = jnp.transpose(img_feas, (0, 2, 1)).reshape(-1, ic)
    ri = (img_f @ params["fc2_w"].T + params["fc2_b"]).reshape(B, N, pc)
    pt = jnp.transpose(point_feas, (0, 2, 1))                      # (B, N, pc)
    scores = jnp.einsum("bip,bjp->bij", ri, pt) / math.sqrt(pc)    # (B, N, N)
    attn = jax.nn.softmax(scores, axis=1)                          # dim=1
    return jnp.einsum("bij,bjp->bip", attn, ri)                    # (B, N, pc)


if __name__ == "__main__":
    B, ic, pc, N = 2, 32, 64, 128   # channels = (ic, pc); N tokens per batch
    key = jax.random.PRNGKey(0)
    k_img, k_pt, k_par = jax.random.split(key, 3)

    img_feas = jax.random.normal(k_img, (B, ic, N), jnp.float32)
    point_feas = jax.random.normal(k_pt, (B, pc, N), jnp.float32)
    params = init_params(k_par, ic, pc)

    out = ia_layer2_forward(img_feas, point_feas, params)
    jax.block_until_ready(out)

    ref = _reference(img_feas, point_feas, params)
    assert out.shape == (B, N, pc)
    assert jnp.allclose(out, ref, atol=1e-4, rtol=1e-4), float(jnp.max(jnp.abs(out - ref)))

    print("KERNEL_OK")
</pallas_src>

<mosaic_0001>
module attributes {stable_mosaic.version = 11 : i64} {
  func.func @_ia2_kernel(%arg0: i32, %arg1: memref<1x32x128xf32, #tpu.memory_space<vmem>>, %arg2: memref<1x64x128xf32, #tpu.memory_space<vmem>>, %arg3: memref<64x32xf32, #tpu.memory_space<vmem>>, %arg4: memref<64x1xf32, #tpu.memory_space<vmem>>, %arg5: memref<1x128x64xf32, #tpu.memory_space<vmem>>) attributes {dimension_semantics = [#tpu.dimension_semantics<parallel>], iteration_bounds = array<i64: 2>, scalar_prefetch = 0 : i64, scratch_operands = 0 : i64, tpu.core_type = #tpu.core_type<tc>, window_params = [{transform_indices = @transform_0, window_bounds = array<i64: 1, 32, 128>}, {transform_indices = @transform_1, window_bounds = array<i64: 1, 64, 128>}, {pipeline_mode = #tpu.pipeline_mode<synchronous>, transform_indices = @transform_2, window_bounds = array<i64: 64, 32>}, {pipeline_mode = #tpu.pipeline_mode<synchronous>, transform_indices = @transform_3, window_bounds = array<i64: 64, 1>}, {transform_indices = @transform_4, window_bounds = array<i64: 1, 128, 64>}]} {
    %c0 = arith.constant 0 : index
    %c0_0 = arith.constant 0 : index
    %c0_1 = arith.constant 0 : index
    %0 = vector.load %arg1[%c0, %c0_0, %c0_1] : memref<1x32x128xf32, #tpu.memory_space<vmem>>, vector<1x32x128xf32>
    %1 = vector.shape_cast %0 : vector<1x32x128xf32> to vector<32x128xf32>
    %c0_2 = arith.constant 0 : index
    %c0_3 = arith.constant 0 : index
    %c0_4 = arith.constant 0 : index
    %2 = vector.load %arg2[%c0_2, %c0_3, %c0_4] : memref<1x64x128xf32, #tpu.memory_space<vmem>>, vector<1x64x128xf32>
    %3 = vector.shape_cast %2 : vector<1x64x128xf32> to vector<64x128xf32>
    %c0_5 = arith.constant 0 : index
    %c0_6 = arith.constant 0 : index
    %4 = vector.load %arg3[%c0_5, %c0_6] : memref<64x32xf32, #tpu.memory_space<vmem>>, vector<64x32xf32>
    %c0_7 = arith.constant 0 : index
    %c0_8 = arith.constant 0 : index
    %5 = vector.load %arg4[%c0_7, %c0_8] : memref<64x1xf32, #tpu.memory_space<vmem>>, vector<64x1xf32>
    %cst = arith.constant dense<0.000000e+00> : vector<64x128xf32>
    %6 = tpu.matmul %4, %1, %cst {dimension_numbers = #tpu.dot_dimension_numbers<[1], [0], [0], [1], [0, 0, 1, 1], [], []>} : vector<64x32xf32>, vector<32x128xf32>, vector<64x128xf32> -> vector<64x128xf32>
    %7 = vector.broadcast %5 : vector<64x1xf32> to vector<64x128xf32>
    %8 = arith.addf %6, %7 : vector<64x128xf32>
    %cst_9 = arith.constant dense<0.000000e+00> : vector<128x128xf32>
    %9 = tpu.matmul %8, %3, %cst_9 {dimension_numbers = #tpu.dot_dimension_numbers<[0], [0], [1], [1], [0, 1, 1, 1], [], []>} : vector<64x128xf32>, vector<64x128xf32>, vector<128x128xf32> -> vector<128x128xf32>
    %cst_10 = arith.constant 1.250000e-01 : f32
    %10 = vector.broadcast %cst_10 : f32 to vector<128x128xf32>
    %11 = arith.mulf %9, %10 : vector<128x128xf32>
    %cst_11 = arith.constant dense<0xFF800000> : vector<128xf32>
    %12 = vector.multi_reduction <maximumf>, %11, %cst_11 [0] : vector<128x128xf32> to vector<128xf32>
    %13 = vector.shape_cast %12 : vector<128xf32> to vector<1x128xf32>
    %14 = vector.broadcast %13 : vector<1x128xf32> to vector<128x128xf32>
    %15 = arith.subf %11, %14 : vector<128x128xf32>
    %16 = math.exp %15 : vector<128x128xf32>
    %cst_12 = arith.constant dense<0.000000e+00> : vector<128xf32>
    %17 = vector.multi_reduction <add>, %16, %cst_12 [0] : vector<128x128xf32> to vector<128xf32>
    %18 = vector.shape_cast %17 : vector<128xf32> to vector<1x128xf32>
    %19 = vector.broadcast %18 : vector<1x128xf32> to vector<128x128xf32>
    %20 = arith.divf %16, %19 : vector<128x128xf32>
    %cst_13 = arith.constant dense<0.000000e+00> : vector<128x64xf32>
    %21 = tpu.matmul %20, %8, %cst_13 {dimension_numbers = #tpu.dot_dimension_numbers<[1], [1], [0], [0], [0, 0, 1, 0], [], []>} : vector<128x128xf32>, vector<64x128xf32>, vector<128x64xf32> -> vector<128x64xf32>
    %c0_14 = arith.constant 0 : index
    %c0_15 = arith.constant 0 : index
    %c0_16 = arith.constant 0 : index
    %22 = vector.load %arg5[%c0_14, %c0_15, %c0_16] : memref<1x128x64xf32, #tpu.memory_space<vmem>>, vector<1x128x64xf32>
    %23 = vector.shape_cast %22 : vector<1x128x64xf32> to vector<128x64xf32>
    %24 = vector.shape_cast %21 : vector<128x64xf32> to vector<1x128x64xf32>
    tpu.vector_store %arg5[%c0_14, %c0_15, %c0_16], %24 {strides = array<i32>} : memref<1x128x64xf32, #tpu.memory_space<vmem>>, vector<1x128x64xf32>,
    return
  }
  func.func @transform_0(%arg0: i32) -> (i32, i32, i32) {
    %c0_i32 = arith.constant 0 : i32
    %c0_i32_0 = arith.constant 0 : i32
    %c0_i32_1 = arith.constant 0 : i32
    return %arg0, %c0_i32, %c0_i32_0 : i32, i32, i32
  }
  func.func @transform_1(%arg0: i32) -> (i32, i32, i32) {
    %c0_i32 = arith.constant 0 : i32
    %c0_i32_0 = arith.constant 0 : i32
    %c0_i32_1 = arith.constant 0 : i32
    return %arg0, %c0_i32, %c0_i32_0 : i32, i32, i32
  }
  func.func @transform_2(%arg0: i32) -> (i32, i32) {
    %c0_i32 = arith.constant 0 : i32
    %c0_i32_0 = arith.constant 0 : i32
    %c0_i32_1 = arith.constant 0 : i32
    return %c0_i32, %c0_i32_0 : i32, i32
  }
  func.func @transform_3(%arg0: i32) -> (i32, i32) {
    %c0_i32 = arith.constant 0 : i32
    %c0_i32_0 = arith.constant 0 : i32
    %c0_i32_1 = arith.constant 0 : i32
    return %c0_i32, %c0_i32_0 : i32, i32
  }
  func.func @transform_4(%arg0: i32) -> (i32, i32, i32) {
    %c0_i32 = arith.constant 0 : i32
    %c0_i32_0 = arith.constant 0 : i32
    %c0_i32_1 = arith.constant 0 : i32
    return %arg0, %c0_i32, %c0_i32_0 : i32, i32, i32
  }
}

</mosaic_0001>

<bundles_post_ra>
// kernel: ia_layer2_forward.1
= control target key start
LH: loop header
LB: loop body
LE: loop exit
PB: predicated region body
PF: predicated region fallthrough
CT: control target
= control target key end

     0   :  { %9 = vsyncpa [#allocation3], 0  ;;  %s1672_s0 = inlined_call_operand.hbm [shape: f32[2,32,128], index: 0, kind: input, shape index: {}]   ;;  %s1673_s1 = inlined_call_operand.vmem [shape: f32[2,64,128], index: 1, kind: input, shape index: {}]   ;;  %s1674_s2 = inlined_call_operand.vmem [shape: f32[64,32], index: 2, kind: input, shape index: {}]   ;;  %s1675_s3 = inlined_call_operand.vmem [shape: f32[64,1], index: 3, kind: input, shape index: {}]   ;;  %s1676_s4 = inlined_call_operand.vmem [shape: f32[2,128,64], index: 4, kind: output, shape index: {}]  }
   0x1   :  { %11 = vsyncpa [#allocation3 + $0x1], 0  ;;  %s1414_s15 = smov 0   ;;  %s1416_s16 = smov 0  }
   0x2   :  { %s1418_s17 = smov 0   ;;  %s1420_s18 = smov 0  }
   0x3 LB: > { %s1433_s19 = sadd.s32 4294967295, %s1383_s18   ;;  %s1436_s20 = sadd.s32 1, %s1383_s18   ;;  %s1383_s18 = sphi %s1420_s18, %s1685_s18   ;;  %s1379_s17 = sphi %s1418_s17, %s1684_s17   ;;  %s1375_s16 = sphi %s1416_s16, %s1683_s16   ;;  %s1371_s15 = sphi %s1414_s15, %s1682_s15  }
   0x4   : > { %s21_s21 = ssub.s32 %s1383_s18, %s1436_s20  ;;  %s24_s22 = sadd.s32 1, %s1379_s17 }
   0x5   : > { %p22_p0 = scmp.eq.s32.totalorder %s21_s21, 0  ;;  %p31_p1 = scmp.ne.s32.totalorder %s1379_s17, %s1375_s16 }
   0x6   : > { %p32_p2 = scmp.eq.s32.totalorder %s1383_s18, 0  ;;  %p37_p3 = scmp.ne.s32.totalorder %s1375_s16, %s1371_s15 }
   0x7   : > { %s1446_s23 = scalar_select %p22_p0, %s1379_s17, %s24_s22  }
   0x8   : > { %p33_p4 = por %p32_p2, %p31_p1  ;;  %p38_p5 = scmp.eq.s32.totalorder %s1433_s19, 0 }
   0x9   : > { %p1248_p6 = scmp.lt.s32.totalorder %s1383_s18, 2  ;;  %s161_s25 = sand.u32 1, %s1379_s17  }
   0xa   : > { %p1450_p7 = por %p38_p5, %p37_p3  ;;  %s1028_s26 = sshll.u32 %s161_s25, 5 }
   0xb   : > { %s1063_s27 = sshll.u32 %s1383_s18, 9  ;;  %s165_s5 = scalar_lea.vmem [#allocation2], %s1028_s26 }
   0xc   : > { %s1678_s24 = scalar_select %p1450_p7, 1, 0 }
   0xd   : > { %s1459_s30 = scalar_lea.hbm %s1672_s0, %s1063_s27  ;;  %s172_s6 = sshll.u32 %s165_s5, 4  ;;  %s1461_s6 = int_to_ptr.vmem [resolvable:$true] %s172_s6 }
   0xe   : > { %p1463_p8 = pnand %p1248_p6, %p33_p4  ;;  %s1468_s8 = scalar_lea.sflag [#allocation3], %s161_s25 }
   0xf   : > { %s1321_s9 = scalar_lea.hbm %s1459_s30, 512  ;;  %s1326_s12 = scalar_lea.hbm %s1672_s0, 1024 }
  0x10   : > { %p1322_p10 = scmp.ne.s32.totalorder %s1459_s30, %s1321_s9  ;;  %p1323_p11 = pneg %p1463_p8 }
  0x11   : > { %p1327_p0 = scmp.lt.s32.totalorder %s1459_s30, %s1672_s0  ;;  %p1328_p1 = scmp.lt.s32.totalorder %s1326_s12, %s1321_s9 }
  0x12   : > { %p1324_p12 = pnand %p1323_p11, %p1322_p10 }
  0x13   : > { %p1329_p2 = por %p1328_p1, %p1327_p0 }
  0x14   : > { %p1325_p13 = pneg %p1324_p12 }
  0x16   : > { %p1330_p3 = pnand %p1329_p2, %p1325_p13 }
  0x18   : > { %1333 = shalt.err (!%p1330_p3)
}
  0x19   : > { %s1334_s15 = scalar_lea.vmem %s1461_s6, 512  ;;  %s1385_s21 = smov [#allocation2]  }
  0x1a   : > { %p1335_p4 = scmp.ne.s32.totalorder %s1461_s6, %s1334_s15  ;;  %s1339_s22 = sshll.u32 %s1385_s21, 4  ;;  %s1340_s22 = int_to_ptr.vmem [resolvable:$false] %s1339_s22 }
  0x1b   : > { %s1341_s25 = scalar_lea.vmem %s1340_s22, 1024  ;;  %p1342_p10 = scmp.lt.s32.totalorder %s1461_s6, %s1340_s22 }
  0x1c   : > { %p1337_p5 = pnand %p1335_p4, %p1323_p11  ;;  %p1343_p12 = scmp.lt.s32.totalorder %s1341_s25, %s1334_s15 }
  0x1e   : > { %p1338_p6 = pneg %p1337_p5  ;;  %p1344_p9 = por %p1343_p12, %p1342_p10 }
  0x20   : > { %p1345_p7 = pnand %p1344_p9, %p1338_p6 }
  0x22   : > { %1348 = shalt.err (!%p1345_p7)
}
  0x23   : > { %s1386_s26 = smov 128   ;;  %s1387_s27 = smov 8  }
  0x24   : > { %1247 = dma.hbm_to_vmem [thread:$0]  (!%p1463_p8), %s1459_s30, 512, %s1461_s6, %s1468_s8, %s1386_s26, %s1386_s26, %s1387_s27  }
  0x25   : > { %p188_p11 = scmp.lt.s32.totalorder %s1383_s18, 3  ;;  %p1680_p13 = scmp.ge.s32.totalorder %s1383_s18, 1 }
  0x27   : > { %p189_p0 = pnand %p1680_p13, %p188_p11 }
  0x28   : > { %s194_s28 = sand.u32 (!%p189_p0), 1, %s1375_s16   ;;  %p1681_p7 = scmp.ne.s32.totalorder (!%p189_p0), %s1678_s24, 0 }
  0x29   : > { %192 = sbr.rel (%p189_p0) target bundleno = 944 (0x3b0), region = 36  ;;  %s1032_s29 = sshll.u32 (!%p189_p0), %s194_s28, 5 }
  0x2a   : > { %s195_s5 = scalar_lea.sflag (!%p189_p0), [#allocation3], %s194_s28  ;;  %s198_s9 = scalar_lea.vmem (!%p189_p0), [#allocation2], %s1032_s29 }
  0x2e   : > { %1366 = dma.done.wait (%p1681_p7), %s195_s5, 512  }
  0x2f   : > { %1368 = vsyncadd (%p1681_p7), %s195_s5, 4294966784  ;;  %v1388_v0 = vmov 0   ;;  %vm306_vm0 = vcmask 261120   ;;  %v241_v1 = vld [vmem:[%s198_s9 + $0x18] sm:$0xff]  ;;  %v240_v2 = vld [vmem:[%s198_s9 + $0x10] sm:$0xff]  ;;  %p228_p8 = scmp.lt.s32.totalorder %s1433_s19, 1 }
  0x30   : > { %1285 = vset.pattern.permute.xlu0 %v1388_v0  ;;  %1286 = vset.pattern.permute.xlu1 %v1388_v0  ;;  %v250_v3 = vld [vmem:[%s1674_s2] sm:$0xff]  ;;  %v239_v4 = vld [vmem:[%s198_s9 + $0x8] sm:$0xff]  ;;  %v260_v7 = vld [vmem:[%s1675_s3 + $0x10] sm:$0xff]  ;;  %vm468_vm1 = vcmask 523264  }
  0x31   : > { %1126 = vmatprep.subr.mxu0 %v241_v1  ;;  %1134 = vmatprep.mubr.msk.f32.mxu0 %vm306_vm0, %v250_v3  ;;  %v238_v5 = vld [vmem:[%s198_s9] sm:$0xff]  ;;  %v251_v8 = vld [vmem:[%s1674_s2 + $0x8] sm:$0xff]  ;;  %v252_v10 = vld [vmem:[%s1674_s2 + $0x10] sm:$0xff]  ;;  %s1687_s19 = smov (!%p228_p8, %s1433_s19), 1 }
  0x32   : > { %1127 = vmatpush3.msra.mxu0 %v241_v1  ;;  %v258_v6 = vld [vmem:[%s1675_s3] sm:$0xff]  ;;  %v259_v9 = vld [vmem:[%s1675_s3 + $0x8] sm:$0xff]  ;;  %278 = vperm.xlu1 %1286, %v260_v7   ;;  %v261_v11 = vld [vmem:[%s1675_s3 + $0x18] sm:$0xff]  ;;  %s1064_s30 = sshll.u32 %s1687_s19, 6  ;;  %s1065_s26 = sshll.u32 %s1687_s19, 7 }
  0x33   : > { %1128 = vmatprep.subr.mxu0 %v240_v2  ;;  %268 = vperm.xlu0 %1285, %v258_v6   ;;  %v253_v12 = vld [vmem:[%s1674_s2 + $0x18] sm:$0xff]  ;;  %v262_v13 = vld [vmem:[%s1675_s3 + $0x20] sm:$0xff]  ;;  %v263_v15 = vld [vmem:[%s1675_s3 + $0x28] sm:$0xff]  ;;  %s1542_s7 = scalar_lea.vmem %s1673_s1, %s1064_s30  ;;  %s1625_s29 = scalar_lea.vmem %s1676_s4, %s1065_s26 }
  0x34   : > { %1129 = vmatpush3.msra.mxu0 %v240_v2  ;;  %v254_v14 = vld [vmem:[%s1674_s2 + $0x20] sm:$0xff]  ;;  %v255_v16 = vld [vmem:[%s1674_s2 + $0x28] sm:$0xff]  ;;  %v264_v17 = vld [vmem:[%s1675_s3 + $0x30] sm:$0xff] }
  0x35   : > { %1130 = vmatprep.subr.mxu0 %v239_v4  ;;  %v249_v18 = vld [vmem:[%s1542_s7 + $0x38] sm:$0xff]  ;;  %v256_v19 = vld [vmem:[%s1674_s2 + $0x30] sm:$0xff]  ;;  %v247_v23 = vld [vmem:[%s1542_s7 + $0x28] sm:$0xff] }
  0x36   : > { %1131 = vmatpush3.msra.mxu0 %v239_v4  ;;  %283 = vperm.xlu1 %1286, %v261_v11   ;;  %v265_v20 = vld [vmem:[%s1675_s3 + $0x38] sm:$0xff]  ;;  %v248_v22 = vld [vmem:[%s1542_s7 + $0x30] sm:$0xff]  ;;  %v246_v24 = vld [vmem:[%s1542_s7 + $0x20] sm:$0xff] }
  0x37   : > { %1132 = vmatprep.subr.mxu0 %v238_v5  ;;  %273 = vperm.xlu0 %1285, %v259_v9   ;;  %v257_v21 = vld [vmem:[%s1674_s2 + $0x38] sm:$0xff]  ;;  %v244_v26 = vld [vmem:[%s1542_s7 + $0x10] sm:$0xff]  ;;  %v243_v27 = vld [vmem:[%s1542_s7 + $0x8] sm:$0xff] }
  0x38   : > { %1133 = vmatpush3.msra.mxu0 %v238_v5  ;;  %1146 = vmatprep.subr.mxu1 %v249_v18  ;;  %v245_v25 = vld [vmem:[%s1542_s7 + $0x18] sm:$0xff]  ;;  %v242_v28 = vld [vmem:[%s1542_s7] sm:$0xff] }
  0x39   : > { %1135 = vmatmul.mubr.msk.f32.vlgmr.msra.gmra.mxu0 %vm306_vm0, %v251_v8  ;;  %1147 = vmatpush3.msra.mxu1 %v249_v18 }
  0x3a   : > { %1137 = vmatprep.mubr.msk.f32.mxu0 %vm306_vm0, %v252_v10  ;;  %293 = vperm.xlu1 %1286, %v263_v15  }
  0x3b   : > { %288 = vperm.xlu0 %1285, %v262_v13   ;;  %1148 = vmatprep.subr.mxu1 %v248_v22 }
  0x3c   : > { %1149 = vmatpush3.msra.mxu1 %v248_v22 }
  0x3d   : > { %1138 = vmatmul.mubr.msk.f32.gmra.mxu0 %vm306_vm0, %v253_v12  ;;  %1150 = vmatprep.subr.mxu1 %v247_v23 }
  0x3e   : > { %1140 = vmatprep.mubr.msk.f32.mxu0 %vm306_vm0, %v254_v14  ;;  %303 = vperm.xlu1 %1286, %v265_v20  }
  0x3f   : > { %298 = vperm.xlu0 %1285, %v264_v17   ;;  %1151 = vmatpush3.msra.mxu1 %v247_v23 }
  0x40   : > { %1152 = vmatprep.subr.mxu1 %v246_v24 }
  0x41   : > { %1141 = vmatmul.mubr.msk.f32.gmra.mxu0 %vm306_vm0, %v255_v16  ;;  %1153 = vmatpush3.msra.mxu1 %v246_v24 }
  0x42   : > { %1143 = vmatprep.mubr.msk.f32.mxu0 %vm306_vm0, %v256_v19  ;;  %1154 = vmatprep.subr.mxu1 %v245_v25 }
  0x43   : > { %1155 = vmatpush3.msra.mxu1 %v245_v25 }
  0x44   : > { %1156 = vmatprep.subr.mxu1 %v244_v26 }
  0x45   : > { %1144 = vmatmul.mubr.msk.f32.gmra.mxu0 %vm306_vm0, %v257_v21  ;;  %1157 = vmatpush3.msra.mxu1 %v244_v26 }
  0x46   : > { %1158 = vmatprep.subr.mxu1 %v243_v27 }
  0x47   : > { %1159 = vmatpush3.msra.mxu1 %v243_v27 }
  0x48   : > { %1160 = vmatprep.subr.mxu1 %v242_v28 }
  0x49   : > { %1161 = vmatpush3.msra.mxu1 %v242_v28 }
  0xad   : > { %v279_v29 = vpop.permute.xlu1 %278 }
  0xae   : > { %v269_v30 = vpop.permute.xlu0 %268 }
  0xb1   : > { %v284_v32 = vpop.permute.xlu1 %283 }
  0xb2   : > { %v274_v33 = vpop.permute.xlu0 %273 }
  0xb5   : > { %v294_v37 = vpop.permute.xlu1 %293 }
  0xb6   : > { %v289_v40 = vpop.permute.xlu0 %288 }
  0xb9   : > { %v304_v44 = vpop.permute.xlu1 %303 }
  0xba   : > { %v299_v47 = vpop.permute.xlu0 %298 }
  0xf9   : > { %v1136_v31 = vpop.f32.mrf.mxu0 }
  0xfa   : > { %v1574_v39 = vadd.f32 %v1136_v31, %v274_v33 }
  0xfb   : > { %v397_v34 = vpop.f32.mrf.mxu0 }
  0xfc   : > { %v1571_v35 = vadd.f32 %v397_v34, %v269_v30 }
  0xfd   : > { %v1139_v36 = vpop.f32.mrf.mxu0 }
  0xfe   : > { %436 = vxpose.xlu0.b32.start [1/8] (short) %v1571_v35, 128  ;;  %v413_v49 = vadd.f32 %v1139_v36, %v284_v32 }
  0xff   : > { %v407_v38 = vpop.f32.mrf.mxu0 }
 0x100   : > { %v408_v43 = vadd.f32 %v407_v38, %v279_v29 }
 0x101   : > { %v1142_v41 = vpop.f32.mrf.mxu0 }
 0x102   : > { %437 = vxpose.xlu0.b32.cont [2/8] (short) %v1574_v39, 128  ;;  %v423_v51 = vadd.f32 %v1142_v41, %v294_v37 }
 0x103   : > { %v417_v42 = vpop.f32.mrf.mxu0 }
 0x104   : > { %v418_v52 = vadd.f32 %v417_v42, %v289_v40 }
 0x105   : > { %v1145_v45 = vpop.f32.mrf.mxu0 }
 0x106   : > { %v433_v46 = vadd.f32 %v1145_v45, %v304_v44  ;;  %438 = vxpose.xlu0.b32.cont [3/8] (short) %v408_v43, 128 }
 0x107   : > { %v427_v48 = vpop.f32.mrf.mxu0 }
 0x108   : > { %v428_v50 = vadd.f32 %v427_v48, %v299_v47  ;;  %1186 = vmatprep.subr.mxu0 %v433_v46  ;;  %1226 = vmatprep.subr.mxu1 %v433_v46 }
 0x109   : > { %1187 = vmatpush3.xpose.msra.mxu0 %v433_v46 }
 0x10a   : > { %1188 = vmatprep.subr.mxu0 %v428_v50  ;;  %439 = vxpose.xlu0.b32.cont [4/8] (short) %v413_v49, 128 }
 0x10d   : > { %1189 = vmatpush3.xpose.msra.mxu0 %v428_v50 }
 0x10e   : > { %1190 = vmatprep.subr.mxu0 %v423_v51  ;;  %440 = vxpose.xlu0.b32.cont [5/8] (short) %v418_v52, 128 }
 0x111   : > { %1191 = vmatpush3.xpose.msra.mxu0 %v423_v51 }
 0x112   : > { %1192 = vmatprep.subr.mxu0 %v418_v52  ;;  %441 = vxpose.xlu0.b32.cont [6/8] (short) %v423_v51, 128 }
 0x115   : > { %1193 = vmatpush3.xpose.msra.mxu0 %v418_v52 }
 0x116   : > { %1194 = vmatprep.subr.mxu0 %v413_v49  ;;  %442 = vxpose.xlu0.b32.cont [7/8] (short) %v428_v50, 128 }
 0x119   : > { %1195 = vmatpush3.xpose.msra.mxu0 %v413_v49 }
 0x11a   : > { %1196 = vmatprep.subr.mxu0 %v408_v43  ;;  %443 = vxpose.xlu0.b32.end [8/8] (short) %v433_v46, 128 }
 0x11d   : > { %1197 = vmatpush3.xpose.msra.mxu0 %v408_v43 }
 0x11e   : > { %1198 = vmatprep.subr.mxu0 %v1574_v39 }
 0x121   : > { %1199 = vmatpush3.xpose.msra.mxu0 %v1574_v39 }
 0x122   : > { %1200 = vmatprep.subr.mxu0 %v1571_v35 }
 0x125   : > { %1201 = vmatpush3.xpose.msra.mxu0 %v1571_v35 }
 0x17a   : > { %v452_v53 = vpop.trf.xlu0 }
 0x17b   : > { %1162 = vmatprep.mubr.msk.f32.mxu1 %vm468_vm1, %v452_v53 }
 0x17e   : > { %v453_v54 = vpop.trf.xlu0 }
 0x17f   : > { %1163 = vmatmul.mubr.msk.f32.vlgmr.msra.gmra.mxu1 %vm468_vm1, %v453_v54 }
 0x180   : > { %1234 = vmatpush3.xpose.msra.mxu1 %v433_v46 }
 0x181   : > { %1227 = vmatprep.subr.mxu1 %v428_v50 }
 0x182   : > { %v454_v55 = vpop.trf.xlu0 }
 0x183   : > { %1165 = vmatprep.mubr.msk.f32.mxu1 %vm468_vm1, %v454_v55 }
 0x184   : > { %1235 = vmatpush3.xpose.msra.mxu1 %v428_v50 }
 0x185   : > { %1228 = vmatprep.subr.mxu1 %v423_v51 }
 0x186   : > { %v455_v56 = vpop.trf.xlu0 }
 0x187   : > { %1166 = vmatmul.mubr.msk.f32.gmra.mxu1 %vm468_vm1, %v455_v56 }
 0x188   : > { %1236 = vmatpush3.xpose.msra.mxu1 %v423_v51 }
 0x189   : > { %1229 = vmatprep.subr.mxu1 %v418_v52 }
 0x18a   : > { %v456_v57 = vpop.trf.xlu0 }
 0x18b   : > { %1168 = vmatprep.mubr.msk.f32.mxu1 %vm468_vm1, %v456_v57 }
 0x18c   : > { %1237 = vmatpush3.xpose.msra.mxu1 %v418_v52 }
 0x18d   : > { %1230 = vmatprep.subr.mxu1 %v413_v49 }
 0x18e   : > { %v457_v58 = vpop.trf.xlu0 }
 0x18f   : > { %1169 = vmatmul.mubr.msk.f32.gmra.mxu1 %vm468_vm1, %v457_v58 }
 0x190   : > { %1238 = vmatpush3.xpose.msra.mxu1 %v413_v49 }
 0x191   : > { %1231 = vmatprep.subr.mxu1 %v408_v43 }
 0x192   : > { %v458_v59 = vpop.trf.xlu0 }
 0x193   : > { %1171 = vmatprep.mubr.msk.f32.mxu1 %vm468_vm1, %v458_v59 }
 0x194   : > { %1239 = vmatpush3.xpose.msra.mxu1 %v408_v43 }
 0x195   : > { %1232 = vmatprep.subr.mxu1 %v1574_v39 }
 0x196   : > { %v459_v60 = vpop.trf.xlu0 }
 0x197   : > { %1172 = vmatmul.mubr.msk.f32.gmra.mxu1 %vm468_vm1, %v459_v60 }
 0x198   : > { %1240 = vmatpush3.xpose.msra.mxu1 %v1574_v39 }
 0x199   : > { %1233 = vmatprep.subr.mxu1 %v1571_v35 }
 0x19a   : > { %v460_v61 = vpop.trf.xlu0 }
 0x19b   : > { %1174 = vmatprep.mubr.msk.f32.mxu1 %vm468_vm1, %v460_v61 }
 0x19c   : > { %1241 = vmatpush3.xpose.msra.mxu1 %v1571_v35 }
 0x19e   : > { %v461_v62 = vpop.trf.xlu0 }
 0x19f   : > { %1175 = vmatmul.mubr.msk.f32.gmra.mxu1 %vm468_vm1, %v461_v62 }
 0x1a2   : > { %v462_v63 = vpop.trf.xlu0 }
 0x1a3   : > { %1177 = vmatprep.mubr.msk.f32.mxu1 %vm468_vm1, %v462_v63 }
 0x1a6   : > { %v463_v0 = vpop.trf.xlu0 }
 0x1a7   : > { %1178 = vmatmul.mubr.msk.f32.gmra.mxu1 %vm468_vm1, %v463_v0 }
 0x1aa   : > { %v464_v1 = vpop.trf.xlu0 }
 0x1ab   : > { %1180 = vmatprep.mubr.msk.f32.mxu1 %vm468_vm1, %v464_v1 }
 0x1ae   : > { %v465_v2 = vpop.trf.xlu0 }
 0x1af   : > { %1181 = vmatmul.mubr.msk.f32.gmra.mxu1 %vm468_vm1, %v465_v2 }
 0x1b2   : > { %v466_v3 = vpop.trf.xlu0 }
 0x1b3   : > { %1183 = vmatprep.mubr.msk.f32.mxu1 %vm468_vm1, %v466_v3 }
 0x1b6   : > { %v467_v4 = vpop.trf.xlu0 }
 0x1b7   : > { %1184 = vmatmul.mubr.msk.f32.gmra.mxu1 %vm468_vm1, %v467_v4 }
 0x23f   : > { %v1164_v5 = vpop.f32.mrf.mxu1 }
 0x240   : > { %v663_v25 = vmul.f32 0.125, %v1164_v5 }
 0x241   : > { %v583_v6 = vpop.f32.mrf.mxu1 }
 0x242   : > { %v662_v22 = vmul.f32 0.125, %v583_v6 }
 0x247   : > { %v1167_v7 = vpop.f32.mrf.mxu1 }
 0x248   : > { %v665_v26 = vmul.f32 0.125, %v1167_v7 }
 0x249   : > { %v593_v8 = vpop.f32.mrf.mxu1 }
 0x24a   : > { %v664_v27 = vmul.f32 0.125, %v593_v8 }
 0x24f   : > { %v1170_v9 = vpop.f32.mrf.mxu1 }
 0x250   : > { %v667_v19 = vmul.f32 0.125, %v1170_v9 }
 0x251   : > { %v603_v10 = vpop.f32.mrf.mxu1 }
 0x252   : > { %v666_v18 = vmul.f32 0.125, %v603_v10  ;;  %v679_v33 = vmax.f32 %v663_v25, %v667_v19 }
 0x254   : > { %v678_v29 = vmax.f32 %v662_v22, %v666_v18 }
 0x257   : > { %v1173_v11 = vpop.f32.mrf.mxu1 }
 0x258   : > { %v669_v20 = vmul.f32 0.125, %v1173_v11 }
 0x259   : > { %v613_v12 = vpop.f32.mrf.mxu1 }
 0x25a   : > { %v668_v23 = vmul.f32 0.125, %v613_v12  ;;  %v681_v34 = vmax.f32 %v665_v26, %v669_v20 }
 0x25c   : > { %v680_v36 = vmax.f32 %v664_v27, %v668_v23 }
 0x25f   : > { %v1176_v13 = vpop.f32.mrf.mxu1 }
 0x260   : > { %v671_v28 = vmul.f32 0.125, %v1176_v13 }
 0x261   : > { %v623_v14 = vpop.f32.mrf.mxu1 }
 0x262   : > { %v670_v24 = vmul.f32 0.125, %v623_v14  ;;  %v683_v40 = vmax.f32 %v679_v33, %v671_v28 }
 0x264   : > { %v682_v37 = vmax.f32 %v678_v29, %v670_v24 }
 0x267   : > { %v1179_v15 = vpop.f32.mrf.mxu1 }
 0x268   : > { %v1601_v30 = vmul.f32 0.125, %v1179_v15 }
 0x269   : > { %v633_v16 = vpop.f32.mrf.mxu1 }
 0x26a   : > { %v672_v31 = vmul.f32 0.125, %v633_v16  ;;  %v685_v42 = vmax.f32 %v681_v34, %v1601_v30 }
 0x26c   : > { %v684_v43 = vmax.f32 %v680_v36, %v672_v31 }
 0x26f   : > { %v1182_v17 = vpop.f32.mrf.mxu1 }
 0x270   : > { %v1605_v38 = vmul.f32 0.125, %v1182_v17 }
 0x271   : > { %v643_v21 = vpop.f32.mrf.mxu1 }
 0x272   : > { %v1603_v32 = vmul.f32 0.125, %v643_v21  ;;  %v687_v46 = vmax.f32 %v683_v40, %v1605_v38 }
 0x274   : > { %v686_v44 = vmax.f32 %v682_v37, %v1603_v32 }
 0x276   : > { %v690_v49 = vmax.f32 %v686_v44, %v687_v46 }
 0x277   : > { %v1185_v35 = vpop.f32.mrf.mxu1 }
 0x278   : > { %v1607_v39 = vmul.f32 0.125, %v1185_v35 }
 0x279   : > { %v653_v41 = vpop.f32.mrf.mxu1 }
 0x27a   : > { %v1611_v45 = vmul.f32 0.125, %v653_v41  ;;  %v689_v47 = vmax.f32 %v685_v42, %v1607_v39 }
 0x27c   : > { %v688_v48 = vmax.f32 %v684_v43, %v1611_v45 }
 0x27e   : > { %v691_v50 = vmax.f32 %v688_v48, %v689_v47 }
 0x280   : > { %v692_v51 = vmax.f32 %v690_v49, %v691_v50 }
 0x282   : > { %v693_v52 = vrot.slane %v692_v51, 4 }
 0x284   : > { %v694_v53 = vmax.f32 %v692_v51, %v693_v52 }
 0x286   : > { %v695_v54 = vrot.slane %v694_v53, 2 }
 0x288   : > { %v696_v55 = vmax.f32 %v694_v53, %v695_v54 }
 0x28a   : > { %v697_v56 = vrot.slane %v696_v55, 1 }
 0x28c   : > { %v698_v57 = vmax.f32 %v696_v55, %v697_v56 }
 0x28e   : > { %v699_v58 = vsub.f32 %v662_v22, %v698_v57  ;;  %v700_v59 = vsub.f32 %v663_v25, %v698_v57  ;;  %v701_v60 = vsub.f32 %v664_v27, %v698_v57  ;;  %v702_v61 = vsub.f32 %v665_v26, %v698_v57 }
 0x28f   : > { %v703_v0 = vsub.f32 %v666_v18, %v698_v57  ;;  %v704_v2 = vsub.f32 %v667_v19, %v698_v57  ;;  %v705_v4 = vsub.f32 %v668_v23, %v698_v57  ;;  %v706_v6 = vsub.f32 %v669_v20, %v698_v57 }
 0x290   : > { %v715_v62 = vmul.f32 1.442695, %v699_v58  ;;  %v717_v63 = vmul.f32 1.442695, %v700_v59  ;;  %v719_v1 = vmul.f32 1.442695, %v701_v60  ;;  %v707_v8 = vsub.f32 %v670_v24, %v698_v57 }
 0x291   : > { %v721_v3 = vmul.f32 1.442695, %v702_v61  ;;  %v723_v5 = vmul.f32 1.442695, %v703_v0  ;;  %v725_v7 = vmul.f32 1.442695, %v704_v2  ;;  %v708_v10 = vsub.f32 %v671_v28, %v698_v57 }
 0x292   : > { %1287 = vpow2.f32 %v715_v62  ;;  %v727_v9 = vmul.f32 1.442695, %v705_v4  ;;  %v729_v11 = vmul.f32 1.442695, %v706_v6  ;;  %v709_v12 = vsub.f32 %v672_v31, %v698_v57 }
 0x293   : > { %1289 = vpow2.f32 %v717_v63  ;;  %v731_v13 = vmul.f32 1.442695, %v707_v8  ;;  %v710_v15 = vsub.f32 %v1601_v30, %v698_v57  ;;  %v733_v16 = vmul.f32 1.442695, %v708_v10 }
 0x294   : > { %1291 = vpow2.f32 %v719_v1  ;;  %v711_v18 = vsub.f32 %v1603_v32, %v698_v57  ;;  %v735_v19 = vmul.f32 1.442695, %v709_v12  ;;  %v712_v22 = vsub.f32 %v1605_v38, %v698_v57 }
 0x295   : > { %1293 = vpow2.f32 %v721_v3  ;;  %v737_v23 = vmul.f32 1.442695, %v710_v15  ;;  %v713_v26 = vsub.f32 %v1611_v45, %v698_v57  ;;  %v714_v30 = vsub.f32 %v1607_v39, %v698_v57 }
 0x296   : > { %1295 = vpow2.f32 %v723_v5  ;;  %v739_v27 = vmul.f32 1.442695, %v711_v18  ;;  %v741_v31 = vmul.f32 1.442695, %v712_v22 }
 0x297   : > { %1297 = vpow2.f32 %v725_v7  ;;  %v743_v34 = vmul.f32 1.442695, %v713_v26  ;;  %v745_v37 = vmul.f32 1.442695, %v714_v30 }
 0x298   : > { %1299 = vpow2.f32 %v727_v9 }
 0x299   : > { %1301 = vpow2.f32 %v729_v11 }
 0x29a   : > { %1303 = vpow2.f32 %v731_v13 }
 0x29b   : > { %1305 = vpow2.f32 %v733_v16 }
 0x29c   : > { %1307 = vpow2.f32 %v735_v19 }
 0x29d   : > { %1309 = vpow2.f32 %v737_v23 }
 0x29e   : > { %1311 = vpow2.f32 %v739_v27 }
 0x29f   : > { %v1288_v14 = vpop.eup %1287  ;;  %1313 = vpow2.f32 %v741_v31 }
 0x2a0   : > { %v1290_v17 = vpop.eup %1289  ;;  %1315 = vpow2.f32 %v743_v34 }
 0x2a1   : > { %v747_v20 = vadd.f32 %v1290_v17, %v1288_v14  ;;  %v1292_v21 = vpop.eup %1291  ;;  %1317 = vpow2.f32 %v745_v37 }
 0x2a2   : > { %v1294_v25 = vpop.eup %1293 }
 0x2a3   : > { %v748_v24 = vadd.f32 %v1292_v21, %v747_v20  ;;  %v1296_v29 = vpop.eup %1295 }
 0x2a4   : > { %v1298_v33 = vpop.eup %1297 }
 0x2a5   : > { %v749_v28 = vadd.f32 %v1294_v25, %v748_v24  ;;  %v1300_v36 = vpop.eup %1299 }
 0x2a6   : > { %v1302_v40 = vpop.eup %1301 }
 0x2a7   : > { %v750_v32 = vadd.f32 %v1296_v29, %v749_v28  ;;  %v1304_v42 = vpop.eup %1303 }
 0x2a8   : > { %v1306_v44 = vpop.eup %1305 }
 0x2a9   : > { %v751_v35 = vadd.f32 %v1298_v33, %v750_v32  ;;  %v1308_v39 = vpop.eup %1307 }
 0x2aa   : > { %v1310_v47 = vpop.eup %1309 }
 0x2ab   : > { %v752_v38 = vadd.f32 %v1300_v36, %v751_v35  ;;  %v1312_v49 = vpop.eup %1311 }
 0x2ac   : > { %v1314_v51 = vpop.eup %1313 }
 0x2ad   : > { %v753_v41 = vadd.f32 %v1302_v40, %v752_v38  ;;  %v1316_v53 = vpop.eup %1315 }
 0x2ae   : > { %v1318_v55 = vpop.eup %1317 }
 0x2af   : > { %v754_v43 = vadd.f32 %v1304_v42, %v753_v41 }
 0x2b1   : > { %v755_v45 = vadd.f32 %v1306_v44, %v754_v43 }
 0x2b3   : > { %v756_v46 = vadd.f32 %v1308_v39, %v755_v45 }
 0x2b5   : > { %v757_v48 = vadd.f32 %v1310_v47, %v756_v46 }
 0x2b7   : > { %v758_v50 = vadd.f32 %v1312_v49, %v757_v48 }
 0x2b9   : > { %v759_v52 = vadd.f32 %v1314_v51, %v758_v50 }
 0x2bb   : > { %v760_v54 = vadd.f32 %v1316_v53, %v759_v52 }
 0x2bd   : > { %v761_v56 = vadd.f32 %v1318_v55, %v760_v54 }
 0x2bf   : > { %v762_v57 = vrot.slane %v761_v56, 4 }
 0x2c1   : > { %v763_v58 = vadd.f32 %v762_v57, %v761_v56 }
 0x2c3   : > { %v764_v59 = vrot.slane %v763_v58, 2 }
 0x2c5   : > { %v765_v60 = vadd.f32 %v764_v59, %v763_v58 }
 0x2c7   : > { %v766_v61 = vrot.slane %v765_v60, 1 }
 0x2c9   : > { %v767_v62 = vadd.f32 %v766_v61, %v765_v60 }
 0x2cb   : > { %1319 = vrcp.f32 %v767_v62 }
 0x2d8   : > { %v1320_v63 = vpop.eup %1319 }
 0x2d9   : > { %v769_v0 = vmul.f32 %v1320_v63, %v1288_v14  ;;  %v779_v1 = vmul.f32 %v1320_v63, %v1308_v39  ;;  %v770_v2 = vmul.f32 %v1320_v63, %v1290_v17  ;;  %v780_v3 = vmul.f32 %v1320_v63, %v1310_v47 }
 0x2da   : > { %v771_v4 = vmul.f32 %v1320_v63, %v1292_v21  ;;  %v781_v5 = vmul.f32 %v1320_v63, %v1312_v49  ;;  %v772_v6 = vmul.f32 %v1320_v63, %v1294_v25  ;;  %v782_v7 = vmul.f32 %v1320_v63, %v1314_v51 }
 0x2db   : > { %1202 = vmatprep.mubr.f32.mxu0 %v769_v0  ;;  %1217 = vmatprep.mubr.f32.mxu1 %v779_v1  ;;  %v773_v8 = vmul.f32 %v1320_v63, %v1296_v29  ;;  %v783_v9 = vmul.f32 %v1320_v63, %v1316_v53  ;;  %v774_v10 = vmul.f32 %v1320_v63, %v1298_v33 }
 0x2dc   : > { %1203 = vmatmul.mubr.f32.vlgmr.msra.gmra.mxu0 %v770_v2  ;;  %1218 = vmatmul.mubr.f32.vlgmr.msra.gmra.mxu1 %v780_v3  ;;  %v784_v11 = vmul.f32 %v1320_v63, %v1318_v55  ;;  %v775_v12 = vmul.f32 %v1320_v63, %v1300_v36  ;;  %v776_v13 = vmul.f32 %v1320_v63, %v1302_v40 }
 0x2dd   : > { %1205 = vmatprep.mubr.f32.mxu0 %v771_v4  ;;  %1220 = vmatprep.mubr.f32.mxu1 %v781_v5  ;;  %v777_v14 = vmul.f32 %v1320_v63, %v1304_v42  ;;  %v778_v15 = vmul.f32 %v1320_v63, %v1306_v44 }
 0x2e0   : > { %1206 = vmatmul.mubr.f32.gmra.mxu0 %v772_v6  ;;  %1221 = vmatmul.mubr.f32.gmra.mxu1 %v782_v7 }
 0x2e1   : > { %1208 = vmatprep.mubr.f32.mxu0 %v773_v8  ;;  %1223 = vmatprep.mubr.f32.mxu1 %v783_v9 }
 0x2e4   : > { %1209 = vmatmul.mubr.f32.gmra.mxu0 %v774_v10  ;;  %1224 = vmatmul.mubr.f32.gmra.mxu1 %v784_v11 }
 0x2e5   : > { %1211 = vmatprep.mubr.f32.mxu0 %v775_v12 }
 0x2e8   : > { %1212 = vmatmul.mubr.f32.gmra.mxu0 %v776_v13 }
 0x2e9   : > { %1214 = vmatprep.mubr.f32.mxu0 %v777_v14 }
 0x2ec   : > { %1215 = vmatmul.mubr.f32.gmra.mxu0 %v778_v15 }
 0x39c   : > { %v1204_v16 = vpop.f32.mrf.mxu0  ;;  %v1219_v17 = vpop.f32.mrf.mxu1 }
 0x39d   : > { %931 = vst.msk [vmem:[%s1625_s29 + $0x8] sm:$0xff] %vm468_vm1, %v1204_v16  ;;  %941 = vst.msk [vmem:[%s1625_s29 + $0x58] sm:$0xff] %vm468_vm1, %v1219_v17 }
 0x39e   : > { %v851_v18 = vpop.f32.mrf.mxu0  ;;  %v901_v19 = vpop.f32.mrf.mxu1 }
 0x39f   : > { %930 = vst.msk [vmem:[%s1625_s29] sm:$0xff] %vm468_vm1, %v851_v18  ;;  %940 = vst.msk [vmem:[%s1625_s29 + $0x50] sm:$0xff] %vm468_vm1, %v901_v19 }
 0x3a0   : > { %v1207_v20 = vpop.f32.mrf.mxu0  ;;  %v1222_v21 = vpop.f32.mrf.mxu1 }
 0x3a1   : > { %933 = vst.msk [vmem:[%s1625_s29 + $0x18] sm:$0xff] %vm468_vm1, %v1207_v20  ;;  %943 = vst.msk [vmem:[%s1625_s29 + $0x68] sm:$0xff] %vm468_vm1, %v1222_v21 }
 0x3a2   : > { %v861_v22 = vpop.f32.mrf.mxu0  ;;  %v911_v23 = vpop.f32.mrf.mxu1 }
 0x3a3   : > { %932 = vst.msk [vmem:[%s1625_s29 + $0x10] sm:$0xff] %vm468_vm1, %v861_v22  ;;  %942 = vst.msk [vmem:[%s1625_s29 + $0x60] sm:$0xff] %vm468_vm1, %v911_v23 }
 0x3a4   : > { %v1210_v24 = vpop.f32.mrf.mxu0  ;;  %v1225_v25 = vpop.f32.mrf.mxu1 }
 0x3a5   : > { %935 = vst.msk [vmem:[%s1625_s29 + $0x28] sm:$0xff] %vm468_vm1, %v1210_v24  ;;  %945 = vst.msk [vmem:[%s1625_s29 + $0x78] sm:$0xff] %vm468_vm1, %v1225_v25 }
 0x3a6   : > { %v871_v26 = vpop.f32.mrf.mxu0  ;;  %v921_v27 = vpop.f32.mrf.mxu1 }
 0x3a7   : > { %934 = vst.msk [vmem:[%s1625_s29 + $0x20] sm:$0xff] %vm468_vm1, %v871_v26  ;;  %944 = vst.msk [vmem:[%s1625_s29 + $0x70] sm:$0xff] %vm468_vm1, %v921_v27 }
 0x3a8   : > { %v1213_v28 = vpop.f32.mrf.mxu0 }
 0x3a9   : > { %937 = vst.msk [vmem:[%s1625_s29 + $0x38] sm:$0xff] %vm468_vm1, %v1213_v28 }
 0x3aa   : > { %v881_v29 = vpop.f32.mrf.mxu0 }
 0x3ab   : > { %936 = vst.msk [vmem:[%s1625_s29 + $0x30] sm:$0xff] %vm468_vm1, %v881_v29 }
 0x3ac   : > { %v1216_v30 = vpop.f32.mrf.mxu0 }
 0x3ad   : > { %939 = vst.msk [vmem:[%s1625_s29 + $0x48] sm:$0xff] %vm468_vm1, %v1216_v30 }
 0x3ae   : > { %v891_v31 = vpop.f32.mrf.mxu0 }
 0x3af   : > { %938 = vst.msk [vmem:[%s1625_s29 + $0x40] sm:$0xff] %vm468_vm1, %v891_v31 }
 0x3b0 PF: > { %p14_p9 = scmp.ge.s32.totalorder %s1436_s20, 4   ;;  %s1682_s15 = smov %s1375_s16 }
 0x3b1   : > { %s1683_s16 = smov %s1379_s17  ;;  %s1684_s17 = smov %s1446_s23 }
 0x3b2   : > { %s1685_s18 = smov %s1436_s20  ;;  %16 = sbr.rel (!%p14_p9) target bundleno = 3 (0x3), region = 79 }
 0x3b7   :  { %967 = vsyncpa [#allocation3], 1 }
 0x3b8   :  { %969 = vsyncpa [#allocation3 + $0x1], 1 }

</bundles_post_ra>
